<compile_context>
chip_gen: v7x
topology: tpu7x:2x2x1
jax: 0.10.0
libtpu: 0.0.40
codegen_flags: <defaults>
</compile_context>

<pallas_src>
import functools

import jax
import jax.numpy as jnp
from jax.experimental import pallas as pl
from jax.experimental.pallas import tpu as pltpu


# ---------------------------------------------------------------------------
# Pallas kernel: one invocation computes the whole forward pass.
# ---------------------------------------------------------------------------
def a3tgcn_kernel(aexp_ref,    # (N*T, N*T) bf16   kron(A_hat, I_T)
                  x_ref,       # (N*T, F)   bf16   node features, node-major / period-minor
                  wcat_ref,    # (F, 2C)    bf16   [W_z | W_h]       (GCNConv weights)
                  bcat_ref,    # (1, 2C)    f32    [b_z | b_h]       (GCNConv biases)
                  wlin_ref,    # (2C, 2C)   bf16   blockdiag(Wz1, Wh1)
                  blin_ref,    # (1, 2C)    f32    [b_lz | b_lh]
                  s_ref,       # (N, N*T)   bf16   kron(I_N, probs)  (attention weights)
                  out_ref):    # (N, C)     f32
    c2 = wcat_ref.shape[1]
    c = c2 // 2

    # (N*T, F) @ (F, 2C): conv feature transform for every (node, period) row.
    xw = jnp.dot(x_ref[...], wcat_ref[...], preferred_element_type=jnp.float32)

    # kron(A_hat, I_T) applies the normalized-adjacency aggregation to all periods
    # and both gates in one dense MXU matmul; add the GCNConv biases.
    cg = jnp.dot(aexp_ref[...], xw.astype(jnp.bfloat16),
                 preferred_element_type=jnp.float32) + bcat_ref[...]

    # Fused linear_z / linear_h.  H == 0 every period (A3TGCN passes H=None to the
    # TGCN cell), so the H-half of the torch Linear weights drops out exactly.
    pre = jnp.dot(cg.astype(jnp.bfloat16), wlin_ref[...],
                  preferred_element_type=jnp.float32) + blin_ref[...]

    z = jax.nn.sigmoid(pre[:, :c])    # update gate
    ht = jnp.tanh(pre[:, c:])         # candidate state
    h_new = (1.0 - z) * ht            # Z*H == 0 since H == 0

    # Attention-weighted sum over periods as one matmul: S = kron(I_N, probs).
    out_ref[...] = jnp.dot(s_ref[...], h_new.astype(jnp.bfloat16),
                           preferred_element_type=jnp.float32)


# ---------------------------------------------------------------------------
# Glue: normalized adjacency (GCNConv, improved=False, add_self_loops=True)
# ---------------------------------------------------------------------------
def build_norm_adj(edge_index, edge_weight, num_nodes,
                   improved=False, add_self_loops=True):
    src = edge_index[0]
    dst = edge_index[1]
    if edge_weight is None:
        edge_weight = jnp.ones((src.shape[0],), dtype=jnp.float32)
    A = jnp.zeros((num_nodes, num_nodes), dtype=jnp.float32)
    A = A.at[dst, src].add(edge_weight)          # message src -> dst
    if add_self_loops:
        fill = 2.0 if improved else 1.0
        A = A + fill * jnp.eye(num_nodes, dtype=jnp.float32)
    deg = A.sum(axis=1)
    d_inv_sqrt = jnp.where(deg > 0, 1.0 / jnp.sqrt(deg), 0.0)
    return d_inv_sqrt[:, None] * A * d_inv_sqrt[None, :]


# ---------------------------------------------------------------------------
# Wrapper: weight packing + pallas_call
# ---------------------------------------------------------------------------
@functools.partial(jax.jit, static_argnames=("num_nodes",))
def a3tgcn_forward(X, edge_index, edge_weight, params, *, num_nodes):
    """X: (N, T, F_in) node features for T periods. Returns (N, C) float32."""
    N, T, F_in = X.shape
    C = params["conv_z_w"].shape[1]

    a_hat = build_norm_adj(edge_index, edge_weight, num_nodes)
    probs = jax.nn.softmax(params["attention"].astype(jnp.float32))

    # --- pack operands (bf16 for MXU, f32 for biases) ------------------------
    x_flat = X.astype(jnp.float32).reshape(N * T, F_in).astype(jnp.bfloat16)
    a_exp = jnp.kron(a_hat, jnp.eye(T, dtype=jnp.float32)).astype(jnp.bfloat16)
    w_cat = jnp.concatenate([params["conv_z_w"], params["conv_h_w"]],
                            axis=1).astype(jnp.bfloat16)                  # (F, 2C)
    b_cat = jnp.concatenate([params["conv_z_b"], params["conv_h_b"]],
                            axis=1).astype(jnp.float32)                   # (1, 2C)
    zcc = jnp.zeros((C, C), jnp.float32)
    wlin_bd = jnp.block([[params["lin_z_w1"], zcc],
                         [zcc, params["lin_h_w1"]]]).astype(jnp.bfloat16)  # (2C, 2C)
    blin = jnp.concatenate([params["lin_z_b"], params["lin_h_b"]],
                           axis=1).astype(jnp.float32)                    # (1, 2C)
    s_mat = jnp.kron(jnp.eye(N, dtype=jnp.float32),
                     probs[None, :]).astype(jnp.bfloat16)                 # (N, N*T)

    NT, C2 = N * T, 2 * C
    full = lambda shape: pl.BlockSpec(shape, lambda i: (0, 0))

    grid_spec = pltpu.PrefetchScalarGridSpec(
        num_scalar_prefetch=0,
        grid=(1,),
        in_specs=[
            full((NT, NT)),        # a_exp
            full((NT, F_in)),      # x_flat
            full((F_in, C2)),      # w_cat
            full((1, C2)),         # b_cat
            full((C2, C2)),        # wlin_bd
            full((1, C2)),         # blin
            full((N, NT)),         # s_mat
        ],
        out_specs=pl.BlockSpec((N, C), lambda i: (0, 0)),
    )

    out = pl.pallas_call(
        a3tgcn_kernel,
        out_shape=jax.ShapeDtypeStruct((N, C), jnp.float32),
        grid_spec=grid_spec,
        compiler_params=pltpu.CompilerParams(
            dimension_semantics=("arbitrary",)),
    )(a_exp, x_flat, w_cat, b_cat, wlin_bd, blin, s_mat)
    return out


# ---------------------------------------------------------------------------
# Pure-JAX f32 reference (full original math, including the zero H/R path)
# ---------------------------------------------------------------------------
def a3tgcn_reference(X, edge_index, edge_weight, params, *, num_nodes):
    N, T, F_in = X.shape
    C = params["conv_z_w"].shape[1]
    a_hat = build_norm_adj(edge_index, edge_weight, num_nodes)
    probs = jax.nn.softmax(params["attention"].astype(jnp.float32))

    def gcn(xp, w, b):
        return a_hat @ (xp @ w) + b

    H_accum = jnp.zeros((N, C), jnp.float32)
    for p in range(T):
        xp = X[:, p, :].astype(jnp.float32)
        H = jnp.zeros((N, C), jnp.float32)
        cz = gcn(xp, params["conv_z_w"], params["conv_z_b"])
        cr = gcn(xp, params["conv_r_w"], params["conv_r_b"])
        ch = gcn(xp, params["conv_h_w"], params["conv_h_b"])
        Z = jax.nn.sigmoid(cz @ params["lin_z_w1"] + H @ params["lin_z_w2"]
                           + params["lin_z_b"])
        R = jax.nn.sigmoid(cr @ params["lin_r_w1"] + H @ params["lin_r_w2"]
                           + params["lin_r_b"])
        Ht = jnp.tanh(ch @ params["lin_h_w1"] + (H * R) @ params["lin_h_w2"]
                      + params["lin_h_b"])
        Hp = Z * H + (1.0 - Z) * Ht
        H_accum = H_accum + probs[p] * Hp
    return H_accum


# ---------------------------------------------------------------------------
# Deterministic parameter init + example run
# ---------------------------------------------------------------------------
def init_params(key, in_channels, out_channels, periods):
    keys = jax.random.split(key, 16)
    C, F = out_channels, in_channels

    def w(k, shape, scale):
        return jax.random.normal(k, shape, jnp.float32) * scale

    return {
        # GCNConv weights (F, C) + bias (1, C)
        "conv_z_w": w(keys[0], (F, C), 0.2), "conv_z_b": w(keys[1], (1, C), 0.1),
        "conv_r_w": w(keys[2], (F, C), 0.2), "conv_r_b": w(keys[3], (1, C), 0.1),
        "conv_h_w": w(keys[4], (F, C), 0.2), "conv_h_b": w(keys[5], (1, C), 0.1),
        # torch Linear(2C, C) weight split into the two C-column halves
        # (w1 multiplies the GCN output, w2 multiplies H), already transposed.
        "lin_z_w1": w(keys[6], (C, C), 0.1), "lin_z_w2": w(keys[7], (C, C), 0.1),
        "lin_z_b": w(keys[8], (1, C), 0.1),
        "lin_r_w1": w(keys[9], (C, C), 0.1), "lin_r_w2": w(keys[10], (C, C), 0.1),
        "lin_r_b": w(keys[11], (1, C), 0.1),
        "lin_h_w1": w(keys[12], (C, C), 0.1), "lin_h_w2": w(keys[13], (C, C), 0.1),
        "lin_h_b": w(keys[14], (1, C), 0.1),
        # attention parameter, uniform init as in the module
        "attention": jax.random.uniform(keys[15], (periods,), jnp.float32),
    }


if __name__ == "__main__":
    N, T, F_IN, C_OUT, E = 16, 8, 8, 32, 48

    key = jax.random.PRNGKey(0)
    k_x, k_ei, k_ew, k_p = jax.random.split(key, 4)

    X = jax.random.normal(k_x, (N, T, F_IN), jnp.float32)       # node feats per period
    edge_index = jax.random.randint(k_ei, (2, E), 0, N, jnp.int32)
    edge_weight = jax.random.uniform(k_ew, (E,), jnp.float32) + 0.1
    params = init_params(k_p, F_IN, C_OUT, T)

    out = a3tgcn_forward(X, edge_index, edge_weight, params, num_nodes=N)
    out = jax.block_until_ready(out)

    ref = a3tgcn_reference(X, edge_index, edge_weight, params, num_nodes=N)
    ref = jax.block_until_ready(ref)

    assert out.shape == (N, C_OUT)
    # bf16 MXU operands (f32 accumulation) -> small, bounded numeric delta vs the
    # pure-f32 reference; the structural restructuring itself is bit-exact math.
    assert jnp.allclose(out, ref, rtol=2e-2, atol=2e-2), (
        float(jnp.max(jnp.abs(out - ref))))

    print("KERNEL_OK")
</pallas_src>

<mosaic_0001>
module attributes {stable_mosaic.version = 11 : i64} {
  func.func private @main(%arg0: i32) attributes {dimension_semantics = [#tpu.dimension_semantics<core_parallel>], iteration_bounds = array<i64: 2>, tpu.core_type = #tpu.core_type<sc_scalar_subcore>, window_params = []} {
    return
  }
}

module attributes {stable_mosaic.version = 11 : i64} {
  func.func private @main(%arg0: i32) attributes {dimension_semantics = [#tpu.dimension_semantics<core_parallel>], iteration_bounds = array<i64: 2>, tpu.core_type = #tpu.core_type<sc_scalar_subcore>, window_params = []} {
    return
  }
}

module attributes {stable_mosaic.version = 11 : i64} {
  func.func @a3tgcn_kernel(%arg0: i32, %arg1: memref<128x128xbf16, #tpu.memory_space<vmem>>, %arg2: memref<128x8xbf16, #tpu.memory_space<vmem>>, %arg3: memref<8x64xbf16, #tpu.memory_space<vmem>>, %arg4: memref<1x64xf32, #tpu.memory_space<vmem>>, %arg5: memref<64x64xbf16, #tpu.memory_space<vmem>>, %arg6: memref<1x64xf32, #tpu.memory_space<vmem>>, %arg7: memref<16x128xbf16, #tpu.memory_space<vmem>>, %arg8: memref<16x32xf32, #tpu.memory_space<vmem>>) attributes {dimension_semantics = [#tpu.dimension_semantics<arbitrary>], iteration_bounds = array<i64: 1>, scalar_prefetch = 0 : i64, scratch_operands = 0 : i64, tpu.core_type = #tpu.core_type<tc>, window_params = [{pipeline_mode = #tpu.pipeline_mode<synchronous>, transform_indices = @transform_0, window_bounds = array<i64: 128, 128>}, {pipeline_mode = #tpu.pipeline_mode<synchronous>, transform_indices = @transform_1, window_bounds = array<i64: 128, 8>}, {pipeline_mode = #tpu.pipeline_mode<synchronous>, transform_indices = @transform_2, window_bounds = array<i64: 8, 64>}, {pipeline_mode = #tpu.pipeline_mode<synchronous>, transform_indices = @transform_3, window_bounds = array<i64: 1, 64>}, {pipeline_mode = #tpu.pipeline_mode<synchronous>, transform_indices = @transform_4, window_bounds = array<i64: 64, 64>}, {pipeline_mode = #tpu.pipeline_mode<synchronous>, transform_indices = @transform_5, window_bounds = array<i64: 1, 64>}, {pipeline_mode = #tpu.pipeline_mode<synchronous>, transform_indices = @transform_6, window_bounds = array<i64: 16, 128>}, {pipeline_mode = #tpu.pipeline_mode<synchronous>, transform_indices = @transform_7, window_bounds = array<i64: 16, 32>}]} {
    %c0 = arith.constant 0 : index
    %c0_0 = arith.constant 0 : index
    %0 = vector.load %arg2[%c0, %c0_0] : memref<128x8xbf16, #tpu.memory_space<vmem>>, vector<128x8xbf16>
    %c0_1 = arith.constant 0 : index
    %c0_2 = arith.constant 0 : index
    %1 = vector.load %arg3[%c0_1, %c0_2] : memref<8x64xbf16, #tpu.memory_space<vmem>>, vector<8x64xbf16>
    %cst = arith.constant dense<0.000000e+00> : vector<128x64xf32>
    %2 = tpu.matmul %0, %1, %cst {dimension_numbers = #tpu.dot_dimension_numbers<[1], [0], [0], [1], [0, 0, 1, 1], [], []>} : vector<128x8xbf16>, vector<8x64xbf16>, vector<128x64xf32> -> vector<128x64xf32>
    %c0_3 = arith.constant 0 : index
    %c0_4 = arith.constant 0 : index
    %3 = vector.load %arg1[%c0_3, %c0_4] : memref<128x128xbf16, #tpu.memory_space<vmem>>, vector<128x128xbf16>
    %4 = arith.truncf %2 : vector<128x64xf32> to vector<128x64xbf16>
    %cst_5 = arith.constant dense<0.000000e+00> : vector<128x64xf32>
    %5 = tpu.matmul %3, %4, %cst_5 {dimension_numbers = #tpu.dot_dimension_numbers<[1], [0], [0], [1], [0, 0, 1, 1], [], []>} : vector<128x128xbf16>, vector<128x64xbf16>, vector<128x64xf32> -> vector<128x64xf32>
    %c0_6 = arith.constant 0 : index
    %c0_7 = arith.constant 0 : index
    %6 = vector.load %arg4[%c0_6, %c0_7] : memref<1x64xf32, #tpu.memory_space<vmem>>, vector<1x64xf32>
    %7 = vector.broadcast %6 : vector<1x64xf32> to vector<128x64xf32>
    %8 = arith.addf %5, %7 : vector<128x64xf32>
    %9 = arith.truncf %8 : vector<128x64xf32> to vector<128x64xbf16>
    %c0_8 = arith.constant 0 : index
    %c0_9 = arith.constant 0 : index
    %10 = vector.load %arg5[%c0_8, %c0_9] : memref<64x64xbf16, #tpu.memory_space<vmem>>, vector<64x64xbf16>
    %cst_10 = arith.constant dense<0.000000e+00> : vector<128x64xf32>
    %11 = tpu.matmul %9, %10, %cst_10 {dimension_numbers = #tpu.dot_dimension_numbers<[1], [0], [0], [1], [0, 0, 1, 1], [], []>} : vector<128x64xbf16>, vector<64x64xbf16>, vector<128x64xf32> -> vector<128x64xf32>
    %c0_11 = arith.constant 0 : index
    %c0_12 = arith.constant 0 : index
    %12 = vector.load %arg6[%c0_11, %c0_12] : memref<1x64xf32, #tpu.memory_space<vmem>>, vector<1x64xf32>
    %13 = vector.broadcast %12 : vector<1x64xf32> to vector<128x64xf32>
    %14 = arith.addf %11, %13 : vector<128x64xf32>
    %15 = vector.extract_strided_slice %14 {offsets = [0, 0], sizes = [128, 32], strides = [1, 1]} : vector<128x64xf32> to vector<128x32xf32>
    %16 = arith.negf %15 : vector<128x32xf32>
    %17 = math.exp %16 : vector<128x32xf32>
    %cst_13 = arith.constant 1.000000e+00 : f32
    %18 = vector.broadcast %cst_13 : f32 to vector<128x32xf32>
    %19 = arith.addf %18, %17 : vector<128x32xf32>
    %20 = arith.divf %18, %19 : vector<128x32xf32>
    %21 = vector.extract_strided_slice %14 {offsets = [0, 32], sizes = [128, 32], strides = [1, 1]} : vector<128x64xf32> to vector<128x32xf32>
    %22 = math.tanh %21 : vector<128x32xf32>
    %cst_14 = arith.constant 1.000000e+00 : f32
    %23 = vector.broadcast %cst_14 : f32 to vector<128x32xf32>
    %24 = arith.subf %23, %20 : vector<128x32xf32>
    %25 = arith.mulf %24, %22 : vector<128x32xf32>
    %c0_15 = arith.constant 0 : index
    %c0_16 = arith.constant 0 : index
    %26 = vector.load %arg7[%c0_15, %c0_16] : memref<16x128xbf16, #tpu.memory_space<vmem>>, vector<16x128xbf16>
    %27 = arith.truncf %25 : vector<128x32xf32> to vector<128x32xbf16>
    %cst_17 = arith.constant dense<0.000000e+00> : vector<16x32xf32>
    %28 = tpu.matmul %26, %27, %cst_17 {dimension_numbers = #tpu.dot_dimension_numbers<[1], [0], [0], [1], [0, 0, 1, 1], [], []>} : vector<16x128xbf16>, vector<128x32xbf16>, vector<16x32xf32> -> vector<16x32xf32>
    %c0_18 = arith.constant 0 : index
    %c0_19 = arith.constant 0 : index
    %29 = vector.load %arg8[%c0_18, %c0_19] : memref<16x32xf32, #tpu.memory_space<vmem>>, vector<16x32xf32>
    tpu.vector_store %arg8[%c0_18, %c0_19], %28 {strides = array<i32>} : memref<16x32xf32, #tpu.memory_space<vmem>>, vector<16x32xf32>,
    return
  }
  func.func @transform_0(%arg0: i32) -> (i32, i32) {
    %c0_i32 = arith.constant 0 : i32
    %c0_i32_0 = arith.constant 0 : i32
    %c0_i32_1 = arith.constant 0 : i32
    return %c0_i32, %c0_i32_0 : i32, i32
  }
  func.func @transform_1(%arg0: i32) -> (i32, i32) {
    %c0_i32 = arith.constant 0 : i32
    %c0_i32_0 = arith.constant 0 : i32
    %c0_i32_1 = arith.constant 0 : i32
    return %c0_i32, %c0_i32_0 : i32, i32
  }
  func.func @transform_2(%arg0: i32) -> (i32, i32) {
    %c0_i32 = arith.constant 0 : i32
    %c0_i32_0 = arith.constant 0 : i32
    %c0_i32_1 = arith.constant 0 : i32
    return %c0_i32, %c0_i32_0 : i32, i32
  }
  func.func @transform_3(%arg0: i32) -> (i32, i32) {
    %c0_i32 = arith.constant 0 : i32
    %c0_i32_0 = arith.constant 0 : i32
    %c0_i32_1 = arith.constant 0 : i32
    return %c0_i32, %c0_i32_0 : i32, i32
  }
  func.func @transform_4(%arg0: i32) -> (i32, i32) {
    %c0_i32 = arith.constant 0 : i32
    %c0_i32_0 = arith.constant 0 : i32
    %c0_i32_1 = arith.constant 0 : i32
    return %c0_i32, %c0_i32_0 : i32, i32
  }
  func.func @transform_5(%arg0: i32) -> (i32, i32) {
    %c0_i32 = arith.constant 0 : i32
    %c0_i32_0 = arith.constant 0 : i32
    %c0_i32_1 = arith.constant 0 : i32
    return %c0_i32, %c0_i32_0 : i32, i32
  }
  func.func @transform_6(%arg0: i32) -> (i32, i32) {
    %c0_i32 = arith.constant 0 : i32
    %c0_i32_0 = arith.constant 0 : i32
    %c0_i32_1 = arith.constant 0 : i32
    return %c0_i32, %c0_i32_0 : i32, i32
  }
  func.func @transform_7(%arg0: i32) -> (i32, i32) {
    %c0_i32 = arith.constant 0 : i32
    %c0_i32_0 = arith.constant 0 : i32
    %c0_i32_1 = arith.constant 0 : i32
    return %c0_i32, %c0_i32_0 : i32, i32
  }
}

</mosaic_0001>

<bundles_post_ra>
// kernel: a3tgcn_forward.1
= control target key start
LH: loop header
LB: loop body
LE: loop exit
PB: predicated region body
PF: predicated region fallthrough
CT: control target
= control target key end

     0   :  { %vm110_vm0 = vcmask 1043456   ;;  %vm85_vm1 = vcmask 64512   ;;  %s1428_s0 = inlined_call_operand.vmem [shape: bf16[128,128], index: 0, kind: input, shape index: {}]   ;;  %s1429_s1 = inlined_call_operand.vmem [shape: bf16[128,8], index: 1, kind: input, shape index: {}]   ;;  %s1430_s2 = inlined_call_operand.vmem [shape: bf16[8,64], index: 2, kind: input, shape index: {}]   ;;  %s1431_s3 = inlined_call_operand.vmem [shape: f32[1,64], index: 3, kind: input, shape index: {}]   ;;  %s1432_s4 = inlined_call_operand.vmem [shape: bf16[64,64], index: 4, kind: input, shape index: {}]   ;;  %s1433_s5 = inlined_call_operand.vmem [shape: f32[1,64], index: 5, kind: input, shape index: {}]   ;;  %s1434_s6 = inlined_call_operand.vmem [shape: bf16[16,128], index: 6, kind: input, shape index: {}]   ;;  %s1435_s7 = inlined_call_operand.hbm [shape: f32[16,32], index: 7, kind: output, shape index: {}]  }
   0x1   :  { %v44_v0 = vld [vmem:[%s1430_s2] sm:$0xf]  ;;  %v1043_v3 = vld [vmem:[%s1429_s1 + $0x8] sm:$0xff]   ;;  %v1044_v4 = vld [vmem:[%s1429_s1 + $0x10] sm:$0xff]  }
   0x2   :  { %v1042_v1 = vld [vmem:[%s1429_s1] sm:$0xff]   ;;  %1035 = vmatprep.subr.msk.bf16.mxu0 %vm110_vm0, %v44_v0  ;;  %v112_v2 = vsel %vm110_vm0, %v44_v0, 0  ;;  %v1045_v5 = vld [vmem:[%s1429_s1 + $0x18] sm:$0xff]   ;;  %v1047_v7 = vld [vmem:[%s1429_s1 + $0x28] sm:$0xff]  }
   0x3   :  { %942 = vmatpush3.bf16.msra.mxu0 %v112_v2  ;;  %943 = vmatprep.mubr.msk.bf16.mxu0 %vm85_vm1, %v1042_v1  ;;  %v1046_v6 = vld [vmem:[%s1429_s1 + $0x20] sm:$0xff]  }
   0x6   :  { %944 = vmatmul.mubr.msk.bf16.vlgmr.msra.gmra.mrb[0].mxu0 %vm85_vm1, %v1043_v3 }
   0x7   :  { %947 = vmatprep.mubr.msk.bf16.mxu0 %vm85_vm1, %v1044_v4 }
   0xe   :  { %948 = vmatmul.mubr.msk.bf16.gmra.mrb[4].mxu0 %vm85_vm1, %v1045_v5 }
   0xf   :  { %951 = vmatprep.mubr.msk.bf16.mxu0 %vm85_vm1, %v1046_v6 }
  0x10   :  { %12 = vsyncpa [#allocation3], 0  ;;  %v1048_v8 = vld [vmem:[%s1429_s1 + $0x30] sm:$0xff]   ;;  %v1049_v9 = vld [vmem:[%s1429_s1 + $0x38] sm:$0xff]   ;;  %vm434_vm2 = vcmask 523264   ;;  %vm1185_vm3 = vmmov 0  }
  0x11   :  { %v1050_v10 = vld [vmem:[%s1428_s0] sm:$0xff]   ;;  %v1059_v12 = vld [vmem:[%s1432_s4 + $0x8] sm:$0xff]   ;;  %v1060_v13 = vld [vmem:[%s1432_s4 + $0x10] sm:$0xff]   ;;  %vm821_vm4 = vcmask 261120   ;;  %s1186_s20 = smov [#allocation2]  }
  0x12   :  { %975 = vmatprep.mubr.bf16.mxu1 %v1050_v10  ;;  %v1058_v11 = vld [vmem:[%s1432_s4] sm:$0xff]   ;;  %v1051_v38 = vld [vmem:[%s1428_s0 + $0x8] sm:$0xff]   ;;  %v1052_v39 = vld [vmem:[%s1428_s0 + $0x10] sm:$0xff]   ;;  %s829_s21 = sshll.u32 %s1186_s20, 4  ;;  %s830_s21 = int_to_ptr.vmem [resolvable:$true] %s829_s21 }
  0x13   :  { %991 = vmatprep.subr.bf16.mxu0 %v1058_v11  ;;  %v1053_v40 = vld [vmem:[%s1428_s0 + $0x18] sm:$0xff]   ;;  %v1054_v41 = vld [vmem:[%s1428_s0 + $0x20] sm:$0xff]   ;;  %v1055_v42 = vld [vmem:[%s1428_s0 + $0x28] sm:$0xff]   ;;  %s1159_s22 = scalar_lea.vmem %s830_s21, 256  ;;  %p1164_p1 = scmp.lt.s32.totalorder %s830_s21, %s830_s21 }
  0x14   :  { %992 = vmatpush3.bf16.msra.mxu0 %v1058_v11  ;;  %v1056_v43 = vld [vmem:[%s1428_s0 + $0x30] sm:$0xff]   ;;  %v1057_v44 = vld [vmem:[%s1428_s0 + $0x38] sm:$0xff]   ;;  %v856_v47 = vld [vmem:[%s1431_s3] ss:$0 sm:$0xff]  ;;  %p1160_p0 = scmp.ne.s32.totalorder %s830_s21, %s1159_s22  ;;  %p1165_p2 = scmp.lt.s32.totalorder %s1159_s22, %s1159_s22 }
  0x15   :  { %993 = vmatprep.subr.bf16.mxu0 %v1059_v12  ;;  %v1061_v45 = vld [vmem:[%s1432_s4 + $0x18] sm:$0xff]   ;;  %s1184_s4 = smov 96  }
  0x16   :  { %952 = vmatmul.mubr.msk.bf16.gmra.mrb[8].mxu0 %vm85_vm1, %v1047_v7  ;;  %p1166_p3 = por %p1165_p2, %p1164_p1 }
  0x17   :  { %955 = vmatprep.mubr.msk.bf16.mxu0 %vm85_vm1, %v1048_v8 }
  0x18   :  { %994 = vmatpush3.bf16.msra.mxu0 %v1059_v12  ;;  %p1167_p4 = pnand %p1166_p3, %p1160_p0 }
  0x19   :  { %995 = vmatprep.subr.bf16.mxu0 %v1060_v13 }
  0x1c   :  { %996 = vmatpush3.bf16.msra.mxu0 %v1060_v13 }
  0x1d   :  { %997 = vmatprep.subr.bf16.mxu0 %v1061_v45 }
  0x1e   :  { %956 = vmatmul.mubr.msk.bf16.gmra.mrb[12].mxu0 %vm85_vm1, %v1049_v9 }
  0x20   :  { %998 = vmatpush3.bf16.msra.mxu0 %v1061_v45 }
  0xd9   :  { %v945_v14 = vpop.f32.mrb[0].mxu0 }
  0xda   :  { %v148_v15 = vpop.f32.mrb[1].mxu0 }
  0xdb   :  { %v946_v16 = vpop.f32.mrb[2].mxu0 }
  0xdc   :  { %v228_v17 = vpack.c.bf16 %v946_v16, %v945_v14  ;;  %v151_v18 = vpop.f32.mrb[3].mxu0 }
  0xdd   :  { %v227_v19 = vpack.c.bf16 %v151_v18, %v148_v15 }
  0xdf   :  { %959 = vmatprep.subr.bf16.mxu1 %v227_v19 }
  0xe0   :  { %960 = vmatpush3.bf16.msra.mxu1 %v227_v19 }
  0xe1   :  { %v949_v20 = vpop.f32.mrb[4].mxu0  ;;  %961 = vmatprep.subr.bf16.mxu1 %v228_v17 }
  0xe2   :  { %v164_v21 = vpop.f32.mrb[5].mxu0 }
  0xe3   :  { %v950_v22 = vpop.f32.mrb[6].mxu0 }
  0xe4   :  { %v230_v23 = vpack.c.bf16 %v950_v22, %v949_v20  ;;  %v167_v24 = vpop.f32.mrb[7].mxu0  ;;  %962 = vmatpush3.bf16.msra.mxu1 %v228_v17 }
  0xe5   :  { %v229_v25 = vpack.c.bf16 %v167_v24, %v164_v21 }
  0xe7   :  { %963 = vmatprep.subr.bf16.mxu1 %v229_v25 }
  0xe8   :  { %964 = vmatpush3.bf16.msra.mxu1 %v229_v25 }
  0xe9   :  { %v953_v26 = vpop.f32.mrb[8].mxu0  ;;  %965 = vmatprep.subr.bf16.mxu1 %v230_v23 }
  0xea   :  { %v180_v27 = vpop.f32.mrb[9].mxu0 }
  0xeb   :  { %v954_v28 = vpop.f32.mrb[10].mxu0 }
  0xec   :  { %v232_v29 = vpack.c.bf16 %v954_v28, %v953_v26  ;;  %v183_v30 = vpop.f32.mrb[11].mxu0  ;;  %966 = vmatpush3.bf16.msra.mxu1 %v230_v23  ;;  %v1314_v23 = vld [vmem:[%s1433_s5] ss:$0 sm:$0xff] }
  0xed   :  { %v231_v31 = vpack.c.bf16 %v183_v30, %v180_v27 }
  0xef   :  { %967 = vmatprep.subr.bf16.mxu1 %v231_v31 }
  0xf0   :  { %968 = vmatpush3.bf16.msra.mxu1 %v231_v31 }
  0xf1   :  { %v957_v32 = vpop.f32.mrb[12].mxu0  ;;  %969 = vmatprep.subr.bf16.mxu1 %v232_v29 }
  0xf2   :  { %v196_v33 = vpop.f32.mrb[13].mxu0 }
  0xf3   :  { %v958_v34 = vpop.f32.mrb[14].mxu0 }
  0xf4   :  { %v234_v35 = vpack.c.bf16 %v958_v34, %v957_v32  ;;  %v199_v36 = vpop.f32.mrb[15].mxu0  ;;  %970 = vmatpush3.bf16.msra.mxu1 %v232_v29 }
  0xf5   :  { %v233_v37 = vpack.c.bf16 %v199_v36, %v196_v33 }
  0xf7   :  { %971 = vmatprep.subr.bf16.mxu1 %v233_v37 }
  0xf8   :  { %972 = vmatpush3.bf16.msra.mxu1 %v233_v37  ;;  %v1183_v37 = vmov 0.0  }
  0xf9   :  { %973 = vmatprep.subr.bf16.mxu1 %v234_v35 }
  0xfc   :  { %974 = vmatpush3.bf16.msra.mxu1 %v234_v35 }
  0xfd   :  { %1015 = vmatprep.subr.bf16.mxu1 %v1183_v37 }
  0xff   :  { %976 = vmatmul.mubr.bf16.vlgmr.msra.gmra.mrb[0].mxu1 %v1051_v38 }
 0x100   :  { %979 = vmatprep.mubr.bf16.mxu1 %v1052_v39 }
 0x107   :  { %980 = vmatmul.mubr.bf16.gmra.mrb[4].mxu1 %v1053_v40 }
 0x108   :  { %983 = vmatprep.mubr.bf16.mxu1 %v1054_v41 }
 0x10f   :  { %984 = vmatmul.mubr.bf16.gmra.mrb[8].mxu1 %v1055_v42 }
 0x110   :  { %987 = vmatprep.mubr.bf16.mxu1 %v1056_v43 }
 0x117   :  { %988 = vmatmul.mubr.bf16.gmra.mrb[12].mxu1 %v1057_v44 }
 0x118   :  { %1031 = vmatprep.mubr.msk.bf16.mxu1 %vm1185_vm3, %v1183_v37 }
 0x1d2   :  { %v977_v46 = vpop.f32.mrb[0].mxu1 }
 0x1d3   :  { %v324_v48 = vpop.f32.mrb[1].mxu1  ;;  %v333_v50 = vadd.f32 %v977_v46, %v856_v47 }
 0x1d4   :  { %v978_v49 = vpop.f32.mrb[2].mxu1  ;;  %v325_v53 = vadd.f32 %v856_v47, %v324_v48 }
 0x1d5   :  { %v336_v51 = vadd.f32 %v978_v49, %v856_v47  ;;  %v327_v52 = vpop.f32.mrb[3].mxu1 }
 0x1d6   :  { %v328_v54 = vadd.f32 %v856_v47, %v327_v52 }
 0x1d7   :  { %v388_v55 = vpack.c.bf16 %v336_v51, %v333_v50 }
 0x1d8   :  { %v387_v56 = vpack.c.bf16 %v328_v54, %v325_v53 }
 0x1da   :  { %v981_v57 = vpop.f32.mrb[4].mxu1  ;;  %999 = vmatprep.mubr.msk.bf16.mxu0 %vm434_vm2, %v387_v56 }
 0x1db   :  { %v349_v58 = vadd.f32 %v981_v57, %v856_v47  ;;  %v340_v59 = vpop.f32.mrb[5].mxu1  ;;  %1000 = vmatmul.mubr.msk.bf16.vlgmr.msra.gmra.mrb[16].mxu0 %vm434_vm2, %v388_v55 }
 0x1dc   :  { %v341_v60 = vadd.f32 %v856_v47, %v340_v59  ;;  %v982_v61 = vpop.f32.mrb[6].mxu1 }
 0x1dd   :  { %v352_v62 = vadd.f32 %v982_v61, %v856_v47  ;;  %v343_v63 = vpop.f32.mrb[7].mxu1 }
 0x1de   :  { %v344_v0 = vadd.f32 %v856_v47, %v343_v63 }
 0x1df   :  { %v390_v1 = vpack.c.bf16 %v352_v62, %v349_v58 }
 0x1e0   :  { %v389_v2 = vpack.c.bf16 %v344_v0, %v341_v60 }
 0x1e2   :  { %v985_v3 = vpop.f32.mrb[8].mxu1  ;;  %1003 = vmatprep.mubr.msk.bf16.mxu0 %vm434_vm2, %v389_v2 }
 0x1e3   :  { %v365_v4 = vadd.f32 %v985_v3, %v856_v47  ;;  %v356_v5 = vpop.f32.mrb[9].mxu1  ;;  %1004 = vmatmul.mubr.msk.bf16.gmra.mrb[20].mxu0 %vm434_vm2, %v390_v1 }
 0x1e4   :  { %v357_v6 = vadd.f32 %v856_v47, %v356_v5  ;;  %v986_v7 = vpop.f32.mrb[10].mxu1 }
 0x1e5   :  { %v368_v8 = vadd.f32 %v986_v7, %v856_v47  ;;  %v359_v9 = vpop.f32.mrb[11].mxu1 }
 0x1e6   :  { %v360_v10 = vadd.f32 %v856_v47, %v359_v9 }
 0x1e7   :  { %v392_v11 = vpack.c.bf16 %v368_v8, %v365_v4 }
 0x1e8   :  { %v391_v12 = vpack.c.bf16 %v360_v10, %v357_v6 }
 0x1ea   :  { %v989_v13 = vpop.f32.mrb[12].mxu1  ;;  %1007 = vmatprep.mubr.msk.bf16.mxu0 %vm434_vm2, %v391_v12 }
 0x1eb   :  { %v381_v14 = vadd.f32 %v989_v13, %v856_v47  ;;  %v372_v15 = vpop.f32.mrb[13].mxu1  ;;  %1008 = vmatmul.mubr.msk.bf16.gmra.mrb[24].mxu0 %vm434_vm2, %v392_v11 }
 0x1ec   :  { %v373_v16 = vadd.f32 %v856_v47, %v372_v15  ;;  %v990_v17 = vpop.f32.mrb[14].mxu1 }
 0x1ed   :  { %v384_v18 = vadd.f32 %v990_v17, %v856_v47  ;;  %v375_v19 = vpop.f32.mrb[15].mxu1 }
 0x1ee   :  { %v376_v20 = vadd.f32 %v856_v47, %v375_v19 }
 0x1ef   :  { %v394_v21 = vpack.c.bf16 %v384_v18, %v381_v14 }
 0x1f0   :  { %v393_v22 = vpack.c.bf16 %v376_v20, %v373_v16 }
 0x1f2   :  { %1011 = vmatprep.mubr.msk.bf16.mxu0 %vm434_vm2, %v393_v22 }
 0x1f3   :  { %1012 = vmatmul.mubr.msk.bf16.gmra.mrb[28].mxu0 %vm434_vm2, %v394_v21 }
 0x2ae   :  { %v1001_v24 = vpop.f32.mrb[16].mxu0 }
 0x2af   :  { %v1317_v25 = vadd.f32 %v1001_v24, %v1314_v23  ;;  %v493_v26 = vpop.f32.mrb[17].mxu0 }
 0x2b0   :  { %v1320_v27 = vadd.f32 %v1314_v23, %v493_v26  ;;  %v1002_v28 = vpop.f32.mrb[18].mxu0 }
 0x2b1   :  { %1063 = vtanh.f32 %v1317_v25  ;;  %v496_v29 = vpop.f32.mrb[19].mxu0  ;;  %v1325_v30 = vadd.f32 %v1002_v28, %v1314_v23  ;;  %v880_v9 = vmul.f32 -1.442695, %v1317_v25 }
 0x2b2   :  { %1065 = vtanh.f32 %v1320_v27  ;;  %v1328_v31 = vadd.f32 %v1314_v23, %v496_v29  ;;  %v878_v11 = vmul.f32 -1.442695, %v1320_v27 }
 0x2b3   :  { %1067 = vtanh.f32 %v1325_v30  ;;  %v881_v10 = vmul.f32 -1.442695, %v1325_v30 }
 0x2b4   :  { %1069 = vtanh.f32 %v1328_v31  ;;  %v879_v12 = vmul.f32 -1.442695, %v1328_v31 }
 0x2b6   :  { %v1005_v32 = vpop.f32.mrb[20].mxu0 }
 0x2b7   :  { %v509_v33 = vpop.f32.mrb[21].mxu0  ;;  %v1338_v39 = vadd.f32 %v1005_v32, %v1314_v23 }
 0x2b8   :  { %v1333_v34 = vadd.f32 %v1314_v23, %v509_v33  ;;  %v1006_v35 = vpop.f32.mrb[22].mxu0 }
 0x2b9   :  { %v512_v36 = vpop.f32.mrb[23].mxu0  ;;  %v1347_v45 = vadd.f32 %v1006_v35, %v1314_v23  ;;  %v884_v15 = vmul.f32 -1.442695, %v1338_v39 }
 0x2ba   :  { %1071 = vtanh.f32 %v1333_v34  ;;  %v1341_v41 = vadd.f32 %v1314_v23, %v512_v36  ;;  %v882_v13 = vmul.f32 -1.442695, %v1333_v34 }
 0x2bb   :  { %v1064_v38 = vpop.eup %1063  ;;  %1073 = vtanh.f32 %v1338_v39  ;;  %v885_v17 = vmul.f32 -1.442695, %v1347_v45 }
 0x2bc   :  { %v1066_v40 = vpop.eup %1065  ;;  %704 = vrot.lane.b32.xlu1 %v1064_v38, %s1184_s4  ;;  %1075 = vtanh.f32 %v1341_v41  ;;  %v883_v14 = vmul.f32 -1.442695, %v1341_v41 }
 0x2bd   :  { %700 = vrot.lane.b32.xlu0 %v1066_v40, %s1184_s4  ;;  %v1068_v44 = vpop.eup %1067 }
 0x2be   :  { %v1009_v42 = vpop.f32.mrb[24].mxu0  ;;  %v1070_v49 = vpop.eup %1069 }
 0x2bf   :  { %v525_v43 = vpop.f32.mrb[25].mxu0  ;;  %v1356_v50 = vadd.f32 %v1009_v42, %v1314_v23 }
 0x2c0   :  { %v1351_v46 = vadd.f32 %v1314_v23, %v525_v43  ;;  %v1010_v47 = vpop.f32.mrb[26].mxu0  ;;  %706 = vrot.lane.b32.xlu1 %v1068_v44, %s1184_s4 }
 0x2c1   :  { %v528_v48 = vpop.f32.mrb[27].mxu0  ;;  %702 = vrot.lane.b32.xlu0 %v1070_v49, %s1184_s4  ;;  %v1364_v55 = vadd.f32 %v1010_v47, %v1314_v23  ;;  %v888_v27 = vmul.f32 -1.442695, %v1356_v50 }
 0x2c2   :  { %1077 = vtanh.f32 %v1351_v46  ;;  %v529_v52 = vadd.f32 %v1314_v23, %v528_v48  ;;  %v886_v19 = vmul.f32 -1.442695, %v1351_v46 }
 0x2c3   :  { %1079 = vtanh.f32 %v1347_v45  ;;  %v889_v28 = vmul.f32 -1.442695, %v1364_v55 }
 0x2c4   :  { %v1072_v51 = vpop.eup %1071  ;;  %1081 = vtanh.f32 %v1356_v50  ;;  %v887_v21 = vmul.f32 -1.442695, %v529_v52 }
 0x2c5   :  { %708 = vrot.lane.b32.xlu0 %v1072_v51, %s1184_s4  ;;  %1083 = vtanh.f32 %v529_v52  ;;  %v1074_v58 = vpop.eup %1073 }
 0x2c6   :  { %v1013_v53 = vpop.f32.mrb[28].mxu0  ;;  %v1076_v60 = vpop.eup %1075 }
 0x2c7   :  { %v541_v54 = vpop.f32.mrb[29].mxu0  ;;  %v1371_v61 = vadd.f32 %v1013_v53, %v1314_v23  ;;  %710 = vrot.lane.b32.xlu1 %v1076_v60, %s1184_s4 }
 0x2c8   :  { %v1367_v56 = vadd.f32 %v1314_v23, %v541_v54  ;;  %v1014_v57 = vpop.f32.mrb[30].mxu0 }
 0x2c9   :  { %v544_v59 = vpop.f32.mrb[31].mxu0  ;;  %712 = vrot.lane.b32.xlu0 %v1074_v58, %s1184_s4  ;;  %v1381_v1 = vadd.f32 %v1014_v57, %v1314_v23  ;;  %v892_v39 = vmul.f32 -1.442695, %v1371_v61 }
 0x2ca   :  { %1085 = vtanh.f32 %v1367_v56  ;;  %v545_v63 = vadd.f32 %v1314_v23, %v544_v59  ;;  %v890_v31 = vmul.f32 -1.442695, %v1367_v56 }
 0x2cb   :  { %1087 = vtanh.f32 %v1364_v55  ;;  %v893_v41 = vmul.f32 -1.442695, %v1381_v1 }
 0x2cc   :  { %v1078_v62 = vpop.eup %1077  ;;  %1089 = vtanh.f32 %v1371_v61  ;;  %v891_v32 = vmul.f32 -1.442695, %v545_v63 }
 0x2cd   :  { %v1080_v0 = vpop.eup %1079  ;;  %716 = vrot.lane.b32.xlu0 %v1078_v62, %s1184_s4  ;;  %1091 = vtanh.f32 %v545_v63 }
 0x2ce   :  { %714 = vrot.lane.b32.xlu1 %v1080_v0, %s1184_s4  ;;  %v1082_v2 = vpop.eup %1081  ;;  %1093 = vtanh.f32 %v1381_v1 }
 0x2cf   :  { %v1084_v3 = vpop.eup %1083  ;;  %1095 = vpow2.f32 %v880_v9 }
 0x2d0   :  { %1097 = vpow2.f32 %v881_v10 }
 0x2d1   :  { %720 = vrot.lane.b32.xlu0 %v1082_v2, %s1184_s4  ;;  %1099 = vpow2.f32 %v878_v11 }
 0x2d2   :  { %718 = vrot.lane.b32.xlu1 %v1084_v3, %s1184_s4  ;;  %1101 = vpow2.f32 %v879_v12 }
 0x2d3   :  { %1103 = vpow2.f32 %v882_v13 }
 0x2d4   :  { %v1086_v4 = vpop.eup %1085  ;;  %1105 = vpow2.f32 %v883_v14 }
 0x2d5   :  { %v1088_v5 = vpop.eup %1087  ;;  %724 = vrot.lane.b32.xlu0 %v1086_v4, %s1184_s4  ;;  %1107 = vpow2.f32 %v884_v15 }
 0x2d6   :  { %722 = vrot.lane.b32.xlu1 %v1088_v5, %s1184_s4  ;;  %v1090_v6 = vpop.eup %1089  ;;  %1109 = vpow2.f32 %v885_v17 }
 0x2d7   :  { %v1092_v7 = vpop.eup %1091  ;;  %1111 = vpow2.f32 %v886_v19 }
 0x2d8   :  { %v1094_v8 = vpop.eup %1093  ;;  %1113 = vpow2.f32 %v887_v21 }
 0x2d9   :  { %728 = vrot.lane.b32.xlu0 %v1090_v6, %s1184_s4  ;;  %v1096_v16 = vpop.eup %1095 }
 0x2da   :  { %726 = vrot.lane.b32.xlu1 %v1092_v7, %s1184_s4  ;;  %v1098_v18 = vpop.eup %1097  ;;  %v606_v23 = vadd.f32 1.0, %v1096_v16 }
 0x2db   :  { %v1100_v20 = vpop.eup %1099  ;;  %v607_v24 = vadd.f32 1.0, %v1098_v18 }
 0x2dc   :  { %v1102_v22 = vpop.eup %1101  ;;  %v604_v25 = vadd.f32 1.0, %v1100_v20  ;;  %1115 = vrcp.f32 %v606_v23 }
 0x2dd   :  { %v605_v26 = vadd.f32 1.0, %v1102_v22  ;;  %1117 = vrcp.f32 %v607_v24  ;;  %v1104_v29 = vpop.eup %1103 }
 0x2de   :  { %730 = vrot.lane.b32.xlu1 %v1094_v8, %s1184_s4  ;;  %1119 = vrcp.f32 %v604_v25  ;;  %v1106_v30 = vpop.eup %1105  ;;  %v608_v34 = vadd.f32 1.0, %v1104_v29 }
 0x2df   :  { %1121 = vrcp.f32 %v605_v26  ;;  %v1108_v33 = vpop.eup %1107  ;;  %v609_v36 = vadd.f32 1.0, %v1106_v30 }
 0x2e0   :  { %1123 = vpow2.f32 %v888_v27  ;;  %v1110_v35 = vpop.eup %1109  ;;  %v610_v44 = vadd.f32 1.0, %v1108_v33 }
 0x2e1   :  { %1125 = vpow2.f32 %v889_v28  ;;  %v1112_v38 = vpop.eup %1111  ;;  %v611_v47 = vadd.f32 1.0, %v1110_v35 }
 0x2e2   :  { %1127 = vpow2.f32 %v890_v31  ;;  %v1114_v40 = vpop.eup %1113  ;;  %v612_v53 = vadd.f32 1.0, %v1112_v38 }
 0x2e3   :  { %1129 = vpow2.f32 %v891_v32  ;;  %v613_v55 = vadd.f32 1.0, %v1114_v40 }
 0x2e4   :  { %1131 = vrcp.f32 %v608_v34 }
 0x2e5   :  { %1133 = vrcp.f32 %v609_v36 }
 0x2e6   :  { %v1116_v42 = vpop.eup %1115  ;;  %1135 = vpow2.f32 %v892_v39 }
 0x2e7   :  { %v1118_v45 = vpop.eup %1117  ;;  %1137 = vpow2.f32 %v893_v41  ;;  %v670_v51 = vsub.f32 1.0, %v1116_v42 }
 0x2e8   :  { %v1120_v48 = vpop.eup %1119  ;;  %v671_v52 = vsub.f32 1.0, %v1118_v45  ;;  %1139 = vrcp.f32 %v610_v44 }
 0x2e9   :  { %v1122_v49 = vpop.eup %1121  ;;  %1141 = vrcp.f32 %v611_v47  ;;  %v668_v58 = vsub.f32 1.0, %v1120_v48 }
 0x2ea   :  { %v1124_v50 = vpop.eup %1123  ;;  %v669_v60 = vsub.f32 1.0, %v1122_v49  ;;  %1143 = vrcp.f32 %v612_v53 }
 0x2eb   :  { %v1126_v56 = vpop.eup %1125  ;;  %v614_v62 = vadd.f32 1.0, %v1124_v50  ;;  %1145 = vrcp.f32 %v613_v55 }
 0x2ec   :  { %v1128_v63 = vpop.eup %1127  ;;  %v615_v4 = vadd.f32 1.0, %v1126_v56 }
 0x2ed   :  { %v1130_v3 = vpop.eup %1129  ;;  %1147 = vrcp.f32 %v614_v62  ;;  %v616_v10 = vadd.f32 1.0, %v1128_v63 }
 0x2ee   :  { %v1132_v5 = vpop.eup %1131  ;;  %1149 = vrcp.f32 %v615_v4  ;;  %v617_v12 = vadd.f32 1.0, %v1130_v3  ;;  %v1062_v3 = vld [vmem:[%s1434_s6] sm:$0xff]  }
 0x2ef   :  { %v1134_v7 = vpop.eup %1133  ;;  %v672_v14 = vsub.f32 1.0, %v1132_v5  ;;  %1151 = vrcp.f32 %v616_v10 }
 0x2f0   :  { %v1136_v9 = vpop.eup %1135  ;;  %v673_v15 = vsub.f32 1.0, %v1134_v7  ;;  %1153 = vrcp.f32 %v617_v12 }
 0x2f1   :  { %v1138_v11 = vpop.eup %1137  ;;  %v618_v21 = vadd.f32 1.0, %v1136_v9 }
 0x2f2   :  { %v1140_v13 = vpop.eup %1139  ;;  %v619_v22 = vadd.f32 1.0, %v1138_v11 }
 0x2f3   :  { %v1142_v16 = vpop.eup %1141  ;;  %v674_v25 = vsub.f32 1.0, %v1140_v13  ;;  %1155 = vrcp.f32 %v618_v21 }
 0x2f4   :  { %v1144_v23 = vpop.eup %1143  ;;  %v675_v26 = vsub.f32 1.0, %v1142_v16  ;;  %1157 = vrcp.f32 %v619_v22 }
 0x2f5   :  { %v1146_v27 = vpop.eup %1145  ;;  %v676_v34 = vsub.f32 1.0, %v1144_v23 }
 0x2f6   :  { %v677_v35 = vsub.f32 1.0, %v1146_v27 }
 0x2f7   :  { %v1148_v32 = vpop.eup %1147 }
 0x2f8   :  { %v1150_v36 = vpop.eup %1149  ;;  %v678_v44 = vsub.f32 1.0, %v1148_v32 }
 0x2f9   :  { %v1152_v42 = vpop.eup %1151  ;;  %v679_v45 = vsub.f32 1.0, %v1150_v36 }
 0x2fa   :  { %v680_v53 = vsub.f32 1.0, %v1152_v42 }
 0x32e   :  { %v705_v43 = vpop.permute.xlu1 %704 }
 0x32f   :  { %v701_v46 = vpop.permute.xlu0 %700  ;;  %v750_v57 = vmul.f32 %v705_v43, %v670_v51 }
 0x330   :  { %v748_v0 = vmul.f32 %v701_v46, %v668_v58  ;;  %v1154_v46 = vpop.eup %1153 }
 0x331   :  { %v1156_v51 = vpop.eup %1155 }
 0x332   :  { %v707_v54 = vpop.permute.xlu1 %706  ;;  %v1158_v55 = vpop.eup %1157 }
 0x333   :  { %v751_v59 = vmul.f32 %v707_v54, %v671_v52  ;;  %v703_v61 = vpop.permute.xlu0 %702  ;;  %v681_v54 = vsub.f32 1.0, %v1154_v46  ;;  %v683_v62 = vsub.f32 1.0, %v1158_v55 }
 0x334   :  { %v749_v2 = vmul.f32 %v703_v61, %v669_v60  ;;  %v682_v61 = vsub.f32 1.0, %v1156_v51 }
 0x335   :  { %v767_v1 = vpack.c.bf16 %v751_v59, %v750_v57 }
 0x336   :  { %v766_v6 = vpack.c.bf16 %v749_v2, %v748_v0 }
 0x337   :  { %v709_v8 = vpop.permute.xlu0 %708 }
 0x338   :  { %1016 = vmatpush3.bf16.msra.mxu1 %v766_v6  ;;  %v752_v19 = vmul.f32 %v709_v8, %v672_v14 }
 0x339   :  { %1017 = vmatprep.subr.bf16.mxu1 %v1183_v37  ;;  %v711_v17 = vpop.permute.xlu1 %710 }
 0x33a   :  { %v753_v20 = vmul.f32 %v711_v17, %v673_v15 }
 0x33b   :  { %v713_v18 = vpop.permute.xlu0 %712 }
 0x33c   :  { %1018 = vmatpush3.bf16.msra.mxu1 %v767_v1  ;;  %v768_v24 = vpack.c.bf16 %v753_v20, %v752_v19  ;;  %v754_v30 = vmul.f32 %v713_v18, %v674_v25 }
 0x33d   :  { %1019 = vmatprep.subr.bf16.mxu1 %v1183_v37 }
 0x33f   :  { %v717_v29 = vpop.permute.xlu0 %716 }
 0x340   :  { %v715_v28 = vpop.permute.xlu1 %714  ;;  %1020 = vmatpush3.bf16.msra.mxu1 %v768_v24  ;;  %v756_v40 = vmul.f32 %v717_v29, %v676_v34 }
 0x341   :  { %v755_v31 = vmul.f32 %v715_v28, %v675_v26  ;;  %1021 = vmatprep.subr.bf16.mxu1 %v1183_v37 }
 0x343   :  { %v769_v33 = vpack.c.bf16 %v755_v31, %v754_v30  ;;  %v721_v39 = vpop.permute.xlu0 %720 }
 0x344   :  { %v719_v38 = vpop.permute.xlu1 %718  ;;  %v758_v49 = vmul.f32 %v721_v39, %v678_v44 }
 0x345   :  { %v757_v41 = vmul.f32 %v719_v38, %v677_v35  ;;  %1022 = vmatpush3.bf16.msra.mxu1 %v769_v33 }
 0x346   :  { %1023 = vmatprep.subr.bf16.mxu1 %v1183_v37 }
 0x347   :  { %v770_v43 = vpack.c.bf16 %v757_v41, %v756_v40  ;;  %v725_v48 = vpop.permute.xlu0 %724 }
 0x348   :  { %v723_v47 = vpop.permute.xlu1 %722  ;;  %v760_v57 = vmul.f32 %v725_v48, %v680_v53 }
 0x349   :  { %v759_v50 = vmul.f32 %v723_v47, %v679_v45  ;;  %1024 = vmatpush3.bf16.msra.mxu1 %v770_v43 }
 0x34a   :  { %1025 = vmatprep.subr.bf16.mxu1 %v1183_v37 }
 0x34b   :  { %v771_v52 = vpack.c.bf16 %v759_v50, %v758_v49  ;;  %v729_v59 = vpop.permute.xlu0 %728 }
 0x34c   :  { %v727_v56 = vpop.permute.xlu1 %726  ;;  %v762_v0 = vmul.f32 %v729_v59, %v682_v61 }
 0x34d   :  { %v761_v58 = vmul.f32 %v727_v56, %v681_v54  ;;  %1026 = vmatpush3.bf16.msra.mxu1 %v771_v52 }
 0x34e   :  { %1027 = vmatprep.subr.bf16.mxu1 %v1183_v37 }
 0x34f   :  { %v772_v60 = vpack.c.bf16 %v761_v58, %v760_v57 }
 0x350   :  { %v731_v63 = vpop.permute.xlu1 %730 }
 0x351   :  { %v763_v1 = vmul.f32 %v731_v63, %v683_v62  ;;  %1028 = vmatpush3.bf16.msra.mxu1 %v772_v60 }
 0x352   :  { %1029 = vmatprep.subr.bf16.mxu1 %v1183_v37 }
 0x353   :  { %v773_v2 = vpack.c.bf16 %v763_v1, %v762_v0 }
 0x355   :  { %1030 = vmatpush3.bf16.msra.mxu1 %v773_v2 }
 0x358   :  { %1032 = vmatmul.mubr.bf16.vlgmr.msra.gmra.mrb[16].mxu1 %v1062_v3 }
 0x42b   :  { %v814_v4 = vpop.f32.mrb[16].mxu1 }
 0x42c   :  { %822 = vst.msk [vmem:[#allocation2] sm:$0xff] %vm821_vm4, %v814_v4  ;;  %v1033_v5 = vpop.f32.mrb[17].mxu1 }
 0x42d   :  { %v817_v6 = vpop.f32.mrb[18].mxu1 }
 0x42e   :  { %823 = vst.msk [vmem:[#allocation2 + $0x8] sm:$0xff] %vm821_vm4, %v817_v6  ;;  %v1034_v7 = vpop.f32.mrb[19].mxu1 }
 0x42f   :  { %1170 = shalt.err (!%p1167_p4)
}
 0x430   :  { %s1171_s24 = scalar_lea.hbm %s1435_s7, 256 }
 0x431   :  { %p1172_p5 = scmp.ne.s32.totalorder %s1435_s7, %s1171_s24  ;;  %p1175_p6 = scmp.lt.u32.totalorder %s1171_s24, %s1435_s7 }
 0x433   :  { %p1177_p7 = pnand %p1175_p6, %p1172_p5 }
 0x435   :  { %1180 = shalt.err (!%p1177_p7)
}
 0x436   :  { %s1187_s28 = smov 128   ;;  %s1188_s29 = smov 8  }
 0x437   :  { %835 = dma.vmem_to_hbm [thread:$0]  %s830_s21, 256, %s1435_s7, [#allocation3], %s1187_s28, %s1187_s28, %s1188_s29  }
 0x438   :  { %1181 = dma.done.wait [#allocation3], 256  }
 0x439   :  { %1182 = vsyncadd [#allocation3], 4294967040 }
 0x43a   :  { %839 = vsyncpa [#allocation3], 1 }

</bundles_post_ra>
